<compile_context>
chip_gen: v5e
topology: v5e:2x2
jax: 0.10.0
libtpu: 0.0.40
codegen_flags: <defaults>
</compile_context>

<pallas_src>
import jax
import jax.numpy as jnp
from jax.experimental import pallas as pl
from jax.experimental.pallas import tpu as pltpu

NEG_SLOPE = 0.01  # torch.nn.LeakyReLU default negative_slope


def _round_up(v, m):
    return ((v + m - 1) // m) * m


def _cdiv(a, b):
    return (a + b - 1) // b


# --------------------------------------------------------------------------------------
# Kernel
# --------------------------------------------------------------------------------------
def _make_kernel(n_layers):
    """Kernel for `n_layers` hidden Linear+LeakyReLU layers + concat-free final Linear."""

    def kernel(*refs):
        # refs: x, (w_i, b_i)*n_layers, wo_chunk_j*(n_layers+1), bo, out, acc_scratch
        x_ref = refs[0]
        idx = 1
        layer_refs = []
        for _ in range(n_layers):
            layer_refs.append((refs[idx], refs[idx + 1]))
            idx += 2
        wo_refs = refs[idx: idx + n_layers + 1]
        idx += n_layers + 1
        bo_ref = refs[idx]
        out_ref = refs[idx + 1]
        acc_ref = refs[idx + 2]  # f32 VMEM accumulator (keeps y off vregs)

        h = x_ref[...]  # compute dtype (bf16)
        # Incremental final projection: x-chunk contribution first.
        acc_ref[...] = jnp.dot(h, wo_refs[0][...], preferred_element_type=jnp.float32)
        for j, (w_ref, b_ref) in enumerate(layer_refs):
            z = jnp.dot(h, w_ref[...], preferred_element_type=jnp.float32) + b_ref[...]
            a = jnp.maximum(z, NEG_SLOPE * z)       # LeakyReLU (f32, no select needed)
            h = a.astype(w_ref.dtype)               # back to compute dtype for next dots
            acc_ref[...] += jnp.dot(h, wo_refs[j + 1][...],
                                    preferred_element_type=jnp.float32)
        out_ref[...] = (acc_ref[...] + bo_ref[...]).astype(out_ref.dtype)

    return kernel


# --------------------------------------------------------------------------------------
# One-time weight preparation (cast + lane padding).  Call once; reuse across forwards.
# --------------------------------------------------------------------------------------
def prepare_params(params, compute_dtype=jnp.bfloat16):
    """Cast weights to the compute dtype and zero-pad hidden / output widths to lane
    multiples (128).  The input feature dim (z_dim) is deliberately left unpadded so the
    x DMA stays minimal."""
    layers = params["layers"]
    wo_chunks = params["wo_chunks"]
    bo = params["bo"]
    out_dim = int(bo.shape[-1])
    out_pad = _round_up(out_dim, 128)
    z_dim = int(wo_chunks[0].shape[0])

    prepped_layers = []
    feat_pads = [z_dim]      # padded width of each concat chunk (x stays unpadded)
    c_in_pad = z_dim
    for (w, b) in layers:
        c_in, c_out = int(w.shape[0]), int(w.shape[1])
        c_out_pad = _round_up(c_out, 128)
        w_p = jnp.pad(w, ((0, c_in_pad - c_in), (0, c_out_pad - c_out))).astype(compute_dtype)
        b_p = jnp.pad(b, ((0, 0), (0, c_out_pad - c_out))).astype(jnp.float32)
        prepped_layers.append((w_p, b_p))
        feat_pads.append(c_out_pad)
        c_in_pad = c_out_pad

    prepped_wo = []
    for wo, fpad in zip(wo_chunks, feat_pads):
        fd = int(wo.shape[0])
        wo_p = jnp.pad(wo, ((0, fpad - fd), (0, out_pad - out_dim))).astype(compute_dtype)
        prepped_wo.append(wo_p)
    bo_p = jnp.pad(bo, ((0, 0), (0, out_pad - out_dim))).astype(jnp.float32)

    return {
        "layers": prepped_layers,
        "wo_chunks": prepped_wo,
        "bo": bo_p,
        "out_dim": out_dim,
        "out_pad": out_pad,
        "z_dim": z_dim,
        "compute_dtype": compute_dtype,
    }


# --------------------------------------------------------------------------------------
# Wrapper
# --------------------------------------------------------------------------------------
def naive_mlp_pallas(x, prepped, *, max_row_tile=512, vmem_cap_bytes=48 * 1024 * 1024):
    """NaiveMLP forward.  x: (..., z_dim) float32.  `prepped` = prepare_params(...)."""
    layers = prepped["layers"]
    wo_chunks = prepped["wo_chunks"]
    bo = prepped["bo"]
    out_dim = prepped["out_dim"]
    out_pad = prepped["out_pad"]
    compute_dtype = prepped["compute_dtype"]
    n_layers = len(layers)

    lead_shape = x.shape[:-1]
    z_dim = x.shape[-1]
    x2 = x.reshape(-1, z_dim).astype(compute_dtype)
    n_rows = x2.shape[0]

    # ---- static weight footprint (single-buffered weights) ----
    weight_bytes = 0
    for (w, b) in layers:
        weight_bytes += w.size * w.dtype.itemsize + b.size * b.dtype.itemsize
    for wo in wo_chunks:
        weight_bytes += wo.size * wo.dtype.itemsize
    weight_bytes += bo.size * bo.dtype.itemsize

    in_item = jnp.dtype(compute_dtype).itemsize
    out_item = jnp.dtype(x.dtype).itemsize

    def footprint(rt):
        # 2x buffered x tile + 2x buffered out tile + f32 accumulator scratch + weights
        return (weight_bytes
                + 2 * rt * z_dim * in_item
                + 2 * rt * out_pad * out_item
                + rt * out_pad * 4)

    # ---- row-tile selection: tall tiles, minimal padding, respect VMEM budget,
    #      >=2 grid steps when rows are plentiful (v7x has 2 TensorCores) ----
    target = max_row_tile
    while target > 64 and footprint(target) > vmem_cap_bytes - (4 << 20):
        target //= 2
    min_tiles = 2 if n_rows >= 256 else 1
    n_tiles = max(min_tiles, _cdiv(n_rows, target))
    row_tile = _round_up(max(_cdiv(n_rows, n_tiles), 16), 16)
    padded_rows = _round_up(n_rows, row_tile)
    if padded_rows != n_rows:
        x2 = jnp.pad(x2, ((0, padded_rows - n_rows), (0, 0)))
    grid = (padded_rows // row_tile,)

    vmem_limit = int(min(vmem_cap_bytes, max(footprint(row_tile) + (4 << 20), 16 << 20)))

    # ---- advisory cost estimate ----
    flops = 0
    for (w, _) in layers:
        flops += 2 * padded_rows * int(w.shape[0]) * int(w.shape[1])
    for wo in wo_chunks:
        flops += 2 * padded_rows * int(wo.shape[0]) * int(wo.shape[1])
    bytes_accessed = (int(x2.size) * in_item + weight_bytes
                      + padded_rows * out_pad * out_item)
    cost = pl.CostEstimate(flops=flops, transcendentals=0, bytes_accessed=bytes_accessed)

    kernel = _make_kernel(n_layers)

    def build_specs(single_buffer_weights):
        wkw = {"pipeline_mode": pl.Buffered(1)} if single_buffer_weights else {}
        in_specs = [pl.BlockSpec((row_tile, z_dim), lambda i: (i, 0))]
        args = []
        for (w, b) in layers:
            in_specs.append(pl.BlockSpec(w.shape, lambda i: (0, 0), **wkw))
            in_specs.append(pl.BlockSpec(b.shape, lambda i: (0, 0), **wkw))
            args += [w, b]
        for wo in wo_chunks:
            in_specs.append(pl.BlockSpec(wo.shape, lambda i: (0, 0), **wkw))
            args.append(wo)
        in_specs.append(pl.BlockSpec(bo.shape, lambda i: (0, 0), **wkw))
        args.append(bo)
        return in_specs, args

    def run(single_buffer_weights):
        in_specs, weight_args = build_specs(single_buffer_weights)
        return pl.pallas_call(
            kernel,
            out_shape=jax.ShapeDtypeStruct((padded_rows, out_pad), x.dtype),
            grid_spec=pltpu.PrefetchScalarGridSpec(
                num_scalar_prefetch=0,
                grid=grid,
                in_specs=in_specs,
                out_specs=pl.BlockSpec((row_tile, out_pad), lambda i: (i, 0)),
                scratch_shapes=[pltpu.VMEM((row_tile, out_pad), jnp.float32)],
            ),
            compiler_params=pltpu.CompilerParams(
                dimension_semantics=("parallel",),
                vmem_limit_bytes=vmem_limit,
            ),
            cost_estimate=cost,
        )(x2, *weight_args)

    try:
        out = run(True)          # single-buffered (grid-invariant) weights
    except Exception:
        out = run(False)         # fallback: default double-buffering if Buffered(1) rejected

    out = out[:n_rows, :out_dim]
    return out.reshape(*lead_shape, out_dim)


# --------------------------------------------------------------------------------------
# Pure-JAX reference (identical to the PyTorch forward, use_bn=False)
# --------------------------------------------------------------------------------------
def naive_mlp_ref(x, params):
    f_list = [x]
    h = x
    for (w, b) in params["layers"]:
        z = h @ w + b[0]
        h = jnp.where(z >= 0, z, NEG_SLOPE * z)
        f_list.append(h)
    f = jnp.concatenate(f_list, axis=-1)
    w_out = jnp.concatenate(params["wo_chunks"], axis=0)
    return f @ w_out + params["bo"][0]


def init_params(key, z_dim, out_dim, hidden_dims):
    """Deterministic synthetic parameters (Linear weights stored transposed: (in, out))."""
    params = {"layers": [], "wo_chunks": [], "bo": None}
    c_in = z_dim
    feat_dims = [z_dim]
    for c_out in hidden_dims:
        key, kw, kb = jax.random.split(key, 3)
        scale = 1.0 / jnp.sqrt(c_in)
        w = jax.random.uniform(kw, (c_in, c_out), jnp.float32, -scale, scale)
        b = jax.random.uniform(kb, (1, c_out), jnp.float32, -scale, scale)
        params["layers"].append((w, b))
        feat_dims.append(c_out)
        c_in = c_out
    c_wide = sum(feat_dims)
    key, kw, kb = jax.random.split(key, 3)
    scale = 1.0 / jnp.sqrt(c_wide)
    w_out_full = jax.random.uniform(kw, (c_wide, out_dim), jnp.float32, -scale, scale)
    params["bo"] = jax.random.uniform(kb, (1, out_dim), jnp.float32, -scale, scale)
    off = 0
    for d in feat_dims:
        params["wo_chunks"].append(w_out_full[off:off + d, :])
        off += d
    return params


if __name__ == "__main__":
    # Small shapes consistent with the module's forward: x is (..., z_dim)
    batch, seq = 2, 8
    z_dim, out_dim = 32, 16
    hidden_dims = (32, 64)
    # TODO(synk): use_bn=True path (BatchNorm1d over last dim) not implemented; default use_bn=False.

    key = jax.random.PRNGKey(0)
    key, kx = jax.random.split(key)
    x = jax.random.normal(kx, (batch, seq, z_dim), jnp.float32)

    params = init_params(key, z_dim, out_dim, hidden_dims)
    prepped = prepare_params(params)              # one-time pad/cast of all weights

    y = naive_mlp_pallas(x, prepped)
    y = jax.block_until_ready(y)

    y_ref = naive_mlp_ref(x.reshape(-1, z_dim), params).reshape(batch, seq, out_dim)
    assert y.shape == (batch, seq, out_dim)
    # bf16 matmul operands (f32 accumulation) -> loosened tolerance vs f32 reference.
    assert jnp.allclose(y, y_ref, atol=3e-2, rtol=3e-2), "mismatch vs reference"
    print("KERNEL_OK")
</pallas_src>

<mosaic_0001>
module attributes {stable_mosaic.version = 11 : i64} {
  func.func @kernel(%arg0: i32, %arg1: memref<16x32xbf16, #tpu.memory_space<vmem>>, %arg2: memref<32x128xbf16, #tpu.memory_space<vmem>>, %arg3: memref<1x128xf32, #tpu.memory_space<vmem>>, %arg4: memref<128x128xbf16, #tpu.memory_space<vmem>>, %arg5: memref<1x128xf32, #tpu.memory_space<vmem>>, %arg6: memref<32x128xbf16, #tpu.memory_space<vmem>>, %arg7: memref<128x128xbf16, #tpu.memory_space<vmem>>, %arg8: memref<128x128xbf16, #tpu.memory_space<vmem>>, %arg9: memref<1x128xf32, #tpu.memory_space<vmem>>, %arg10: memref<16x128xf32, #tpu.memory_space<vmem>>, %arg11: memref<16x128xf32, #tpu.memory_space<vmem>>) attributes {dimension_semantics = [#tpu.dimension_semantics<parallel>], iteration_bounds = array<i64: 1>, scalar_prefetch = 0 : i64, scratch_operands = 1 : i64, tpu.core_type = #tpu.core_type<tc>, window_params = [{transform_indices = @transform_0, window_bounds = array<i64: 16, 32>}, {pipeline_mode = #tpu.pipeline_mode<synchronous>, transform_indices = @transform_1, window_bounds = array<i64: 32, 128>}, {pipeline_mode = #tpu.pipeline_mode<synchronous>, transform_indices = @transform_2, window_bounds = array<i64: 1, 128>}, {pipeline_mode = #tpu.pipeline_mode<synchronous>, transform_indices = @transform_3, window_bounds = array<i64: 128, 128>}, {pipeline_mode = #tpu.pipeline_mode<synchronous>, transform_indices = @transform_4, window_bounds = array<i64: 1, 128>}, {pipeline_mode = #tpu.pipeline_mode<synchronous>, transform_indices = @transform_5, window_bounds = array<i64: 32, 128>}, {pipeline_mode = #tpu.pipeline_mode<synchronous>, transform_indices = @transform_6, window_bounds = array<i64: 128, 128>}, {pipeline_mode = #tpu.pipeline_mode<synchronous>, transform_indices = @transform_7, window_bounds = array<i64: 128, 128>}, {pipeline_mode = #tpu.pipeline_mode<synchronous>, transform_indices = @transform_8, window_bounds = array<i64: 1, 128>}, {transform_indices = @transform_9, window_bounds = array<i64: 16, 128>}]} {
    %c0 = arith.constant 0 : index
    %c0_0 = arith.constant 0 : index
    %0 = vector.load %arg1[%c0, %c0_0] : memref<16x32xbf16, #tpu.memory_space<vmem>>, vector<16x32xbf16>
    %c0_1 = arith.constant 0 : index
    %c0_2 = arith.constant 0 : index
    %1 = vector.load %arg6[%c0_1, %c0_2] : memref<32x128xbf16, #tpu.memory_space<vmem>>, vector<32x128xbf16>
    %cst = arith.constant dense<0.000000e+00> : vector<16x128xf32>
    %2 = tpu.matmul %0, %1, %cst {dimension_numbers = #tpu.dot_dimension_numbers<[1], [0], [0], [1], [0, 0, 1, 1], [], []>} : vector<16x32xbf16>, vector<32x128xbf16>, vector<16x128xf32> -> vector<16x128xf32>
    %c0_3 = arith.constant 0 : index
    %c0_4 = arith.constant 0 : index
    %3 = vector.load %arg11[%c0_3, %c0_4] : memref<16x128xf32, #tpu.memory_space<vmem>>, vector<16x128xf32>
    tpu.vector_store %arg11[%c0_3, %c0_4], %2 {strides = array<i32>} : memref<16x128xf32, #tpu.memory_space<vmem>>, vector<16x128xf32>,
    %c0_5 = arith.constant 0 : index
    %c0_6 = arith.constant 0 : index
    %4 = vector.load %arg2[%c0_5, %c0_6] : memref<32x128xbf16, #tpu.memory_space<vmem>>, vector<32x128xbf16>
    %cst_7 = arith.constant dense<0.000000e+00> : vector<16x128xf32>
    %5 = tpu.matmul %0, %4, %cst_7 {dimension_numbers = #tpu.dot_dimension_numbers<[1], [0], [0], [1], [0, 0, 1, 1], [], []>} : vector<16x32xbf16>, vector<32x128xbf16>, vector<16x128xf32> -> vector<16x128xf32>
    %c0_8 = arith.constant 0 : index
    %c0_9 = arith.constant 0 : index
    %6 = vector.load %arg3[%c0_8, %c0_9] : memref<1x128xf32, #tpu.memory_space<vmem>>, vector<1x128xf32>
    %7 = vector.broadcast %6 : vector<1x128xf32> to vector<16x128xf32>
    %8 = arith.addf %5, %7 : vector<16x128xf32>
    %cst_10 = arith.constant 0.00999999977 : f32
    %9 = vector.broadcast %cst_10 : f32 to vector<16x128xf32>
    %10 = arith.mulf %9, %8 : vector<16x128xf32>
    %11 = arith.maximumf %8, %10 : vector<16x128xf32>
    %12 = arith.truncf %11 : vector<16x128xf32> to vector<16x128xbf16>
    %c0_11 = arith.constant 0 : index
    %c0_12 = arith.constant 0 : index
    %13 = vector.load %arg11[%c0_11, %c0_12] : memref<16x128xf32, #tpu.memory_space<vmem>>, vector<16x128xf32>
    %c0_13 = arith.constant 0 : index
    %c0_14 = arith.constant 0 : index
    %14 = vector.load %arg7[%c0_13, %c0_14] : memref<128x128xbf16, #tpu.memory_space<vmem>>, vector<128x128xbf16>
    %cst_15 = arith.constant dense<0.000000e+00> : vector<16x128xf32>
    %15 = tpu.matmul %12, %14, %cst_15 {dimension_numbers = #tpu.dot_dimension_numbers<[1], [0], [0], [1], [0, 0, 1, 1], [], []>} : vector<16x128xbf16>, vector<128x128xbf16>, vector<16x128xf32> -> vector<16x128xf32>
    %16 = arith.addf %13, %15 : vector<16x128xf32>
    %c0_16 = arith.constant 0 : index
    %c0_17 = arith.constant 0 : index
    %17 = vector.load %arg11[%c0_16, %c0_17] : memref<16x128xf32, #tpu.memory_space<vmem>>, vector<16x128xf32>
    tpu.vector_store %arg11[%c0_16, %c0_17], %16 {strides = array<i32>} : memref<16x128xf32, #tpu.memory_space<vmem>>, vector<16x128xf32>,
    %c0_18 = arith.constant 0 : index
    %c0_19 = arith.constant 0 : index
    %18 = vector.load %arg4[%c0_18, %c0_19] : memref<128x128xbf16, #tpu.memory_space<vmem>>, vector<128x128xbf16>
    %cst_20 = arith.constant dense<0.000000e+00> : vector<16x128xf32>
    %19 = tpu.matmul %12, %18, %cst_20 {dimension_numbers = #tpu.dot_dimension_numbers<[1], [0], [0], [1], [0, 0, 1, 1], [], []>} : vector<16x128xbf16>, vector<128x128xbf16>, vector<16x128xf32> -> vector<16x128xf32>
    %c0_21 = arith.constant 0 : index
    %c0_22 = arith.constant 0 : index
    %20 = vector.load %arg5[%c0_21, %c0_22] : memref<1x128xf32, #tpu.memory_space<vmem>>, vector<1x128xf32>
    %21 = vector.broadcast %20 : vector<1x128xf32> to vector<16x128xf32>
    %22 = arith.addf %19, %21 : vector<16x128xf32>
    %cst_23 = arith.constant 0.00999999977 : f32
    %23 = vector.broadcast %cst_23 : f32 to vector<16x128xf32>
    %24 = arith.mulf %23, %22 : vector<16x128xf32>
    %25 = arith.maximumf %22, %24 : vector<16x128xf32>
    %26 = arith.truncf %25 : vector<16x128xf32> to vector<16x128xbf16>
    %c0_24 = arith.constant 0 : index
    %c0_25 = arith.constant 0 : index
    %27 = vector.load %arg11[%c0_24, %c0_25] : memref<16x128xf32, #tpu.memory_space<vmem>>, vector<16x128xf32>
    %c0_26 = arith.constant 0 : index
    %c0_27 = arith.constant 0 : index
    %28 = vector.load %arg8[%c0_26, %c0_27] : memref<128x128xbf16, #tpu.memory_space<vmem>>, vector<128x128xbf16>
    %cst_28 = arith.constant dense<0.000000e+00> : vector<16x128xf32>
    %29 = tpu.matmul %26, %28, %cst_28 {dimension_numbers = #tpu.dot_dimension_numbers<[1], [0], [0], [1], [0, 0, 1, 1], [], []>} : vector<16x128xbf16>, vector<128x128xbf16>, vector<16x128xf32> -> vector<16x128xf32>
    %30 = arith.addf %27, %29 : vector<16x128xf32>
    %c0_29 = arith.constant 0 : index
    %c0_30 = arith.constant 0 : index
    %31 = vector.load %arg11[%c0_29, %c0_30] : memref<16x128xf32, #tpu.memory_space<vmem>>, vector<16x128xf32>
    tpu.vector_store %arg11[%c0_29, %c0_30], %30 {strides = array<i32>} : memref<16x128xf32, #tpu.memory_space<vmem>>, vector<16x128xf32>,
    %c0_31 = arith.constant 0 : index
    %c0_32 = arith.constant 0 : index
    %32 = vector.load %arg11[%c0_31, %c0_32] : memref<16x128xf32, #tpu.memory_space<vmem>>, vector<16x128xf32>
    %c0_33 = arith.constant 0 : index
    %c0_34 = arith.constant 0 : index
    %33 = vector.load %arg9[%c0_33, %c0_34] : memref<1x128xf32, #tpu.memory_space<vmem>>, vector<1x128xf32>
    %34 = vector.broadcast %33 : vector<1x128xf32> to vector<16x128xf32>
    %35 = arith.addf %32, %34 : vector<16x128xf32>
    %c0_35 = arith.constant 0 : index
    %c0_36 = arith.constant 0 : index
    %36 = vector.load %arg10[%c0_35, %c0_36] : memref<16x128xf32, #tpu.memory_space<vmem>>, vector<16x128xf32>
    tpu.vector_store %arg10[%c0_35, %c0_36], %35 {strides = array<i32>} : memref<16x128xf32, #tpu.memory_space<vmem>>, vector<16x128xf32>,
    return
  }
  func.func @transform_0(%arg0: i32) -> (i32, i32) {
    %c0_i32 = arith.constant 0 : i32
    %c0_i32_0 = arith.constant 0 : i32
    return %arg0, %c0_i32 : i32, i32
  }
  func.func @transform_1(%arg0: i32) -> (i32, i32) {
    %c0_i32 = arith.constant 0 : i32
    %c0_i32_0 = arith.constant 0 : i32
    %c0_i32_1 = arith.constant 0 : i32
    return %c0_i32, %c0_i32_0 : i32, i32
  }
  func.func @transform_2(%arg0: i32) -> (i32, i32) {
    %c0_i32 = arith.constant 0 : i32
    %c0_i32_0 = arith.constant 0 : i32
    %c0_i32_1 = arith.constant 0 : i32
    return %c0_i32, %c0_i32_0 : i32, i32
  }
  func.func @transform_3(%arg0: i32) -> (i32, i32) {
    %c0_i32 = arith.constant 0 : i32
    %c0_i32_0 = arith.constant 0 : i32
    %c0_i32_1 = arith.constant 0 : i32
    return %c0_i32, %c0_i32_0 : i32, i32
  }
  func.func @transform_4(%arg0: i32) -> (i32, i32) {
    %c0_i32 = arith.constant 0 : i32
    %c0_i32_0 = arith.constant 0 : i32
    %c0_i32_1 = arith.constant 0 : i32
    return %c0_i32, %c0_i32_0 : i32, i32
  }
  func.func @transform_5(%arg0: i32) -> (i32, i32) {
    %c0_i32 = arith.constant 0 : i32
    %c0_i32_0 = arith.constant 0 : i32
    %c0_i32_1 = arith.constant 0 : i32
    return %c0_i32, %c0_i32_0 : i32, i32
  }
  func.func @transform_6(%arg0: i32) -> (i32, i32) {
    %c0_i32 = arith.constant 0 : i32
    %c0_i32_0 = arith.constant 0 : i32
    %c0_i32_1 = arith.constant 0 : i32
    return %c0_i32, %c0_i32_0 : i32, i32
  }
  func.func @transform_7(%arg0: i32) -> (i32, i32) {
    %c0_i32 = arith.constant 0 : i32
    %c0_i32_0 = arith.constant 0 : i32
    %c0_i32_1 = arith.constant 0 : i32
    return %c0_i32, %c0_i32_0 : i32, i32
  }
  func.func @transform_8(%arg0: i32) -> (i32, i32) {
    %c0_i32 = arith.constant 0 : i32
    %c0_i32_0 = arith.constant 0 : i32
    %c0_i32_1 = arith.constant 0 : i32
    return %c0_i32, %c0_i32_0 : i32, i32
  }
  func.func @transform_9(%arg0: i32) -> (i32, i32) {
    %c0_i32 = arith.constant 0 : i32
    %c0_i32_0 = arith.constant 0 : i32
    return %arg0, %c0_i32 : i32, i32
  }
}

module attributes {stable_mosaic.version = 11 : i64} {
  func.func @kernel(%arg0: i32, %arg1: memref<16x32xbf16, #tpu.memory_space<vmem>>, %arg2: memref<32x128xbf16, #tpu.memory_space<vmem>>, %arg3: memref<1x128xf32, #tpu.memory_space<vmem>>, %arg4: memref<128x128xbf16, #tpu.memory_space<vmem>>, %arg5: memref<1x128xf32, #tpu.memory_space<vmem>>, %arg6: memref<32x128xbf16, #tpu.memory_space<vmem>>, %arg7: memref<128x128xbf16, #tpu.memory_space<vmem>>, %arg8: memref<128x128xbf16, #tpu.memory_space<vmem>>, %arg9: memref<1x128xf32, #tpu.memory_space<vmem>>, %arg10: memref<16x128xf32, #tpu.memory_space<vmem>>, %arg11: memref<16x128xf32, #tpu.memory_space<vmem>>) attributes {dimension_semantics = [#tpu.dimension_semantics<parallel>], iteration_bounds = array<i64: 1>, scalar_prefetch = 0 : i64, scratch_operands = 1 : i64, tpu.core_type = #tpu.core_type<tc>, window_params = [{transform_indices = @transform_0, window_bounds = array<i64: 16, 32>}, {pipeline_mode = #tpu.pipeline_mode<synchronous>, transform_indices = @transform_1, window_bounds = array<i64: 32, 128>}, {pipeline_mode = #tpu.pipeline_mode<synchronous>, transform_indices = @transform_2, window_bounds = array<i64: 1, 128>}, {pipeline_mode = #tpu.pipeline_mode<synchronous>, transform_indices = @transform_3, window_bounds = array<i64: 128, 128>}, {pipeline_mode = #tpu.pipeline_mode<synchronous>, transform_indices = @transform_4, window_bounds = array<i64: 1, 128>}, {pipeline_mode = #tpu.pipeline_mode<synchronous>, transform_indices = @transform_5, window_bounds = array<i64: 32, 128>}, {pipeline_mode = #tpu.pipeline_mode<synchronous>, transform_indices = @transform_6, window_bounds = array<i64: 128, 128>}, {pipeline_mode = #tpu.pipeline_mode<synchronous>, transform_indices = @transform_7, window_bounds = array<i64: 128, 128>}, {pipeline_mode = #tpu.pipeline_mode<synchronous>, transform_indices = @transform_8, window_bounds = array<i64: 1, 128>}, {transform_indices = @transform_9, window_bounds = array<i64: 16, 128>}]} {
    %c0 = arith.constant 0 : index
    %c0_0 = arith.constant 0 : index
    %0 = vector.load %arg1[%c0, %c0_0] : memref<16x32xbf16, #tpu.memory_space<vmem>>, vector<16x32xbf16>
    %c0_1 = arith.constant 0 : index
    %c0_2 = arith.constant 0 : index
    %1 = vector.load %arg6[%c0_1, %c0_2] : memref<32x128xbf16, #tpu.memory_space<vmem>>, vector<32x128xbf16>
    %cst = arith.constant dense<0.000000e+00> : vector<16x128xf32>
    %2 = tpu.matmul %0, %1, %cst {dimension_numbers = #tpu.dot_dimension_numbers<[1], [0], [0], [1], [0, 0, 1, 1], [], []>} : vector<16x32xbf16>, vector<32x128xbf16>, vector<16x128xf32> -> vector<16x128xf32>
    %c0_3 = arith.constant 0 : index
    %c0_4 = arith.constant 0 : index
    %3 = vector.load %arg11[%c0_3, %c0_4] : memref<16x128xf32, #tpu.memory_space<vmem>>, vector<16x128xf32>
    tpu.vector_store %arg11[%c0_3, %c0_4], %2 {strides = array<i32>} : memref<16x128xf32, #tpu.memory_space<vmem>>, vector<16x128xf32>,
    %c0_5 = arith.constant 0 : index
    %c0_6 = arith.constant 0 : index
    %4 = vector.load %arg2[%c0_5, %c0_6] : memref<32x128xbf16, #tpu.memory_space<vmem>>, vector<32x128xbf16>
    %cst_7 = arith.constant dense<0.000000e+00> : vector<16x128xf32>
    %5 = tpu.matmul %0, %4, %cst_7 {dimension_numbers = #tpu.dot_dimension_numbers<[1], [0], [0], [1], [0, 0, 1, 1], [], []>} : vector<16x32xbf16>, vector<32x128xbf16>, vector<16x128xf32> -> vector<16x128xf32>
    %c0_8 = arith.constant 0 : index
    %c0_9 = arith.constant 0 : index
    %6 = vector.load %arg3[%c0_8, %c0_9] : memref<1x128xf32, #tpu.memory_space<vmem>>, vector<1x128xf32>
    %7 = vector.broadcast %6 : vector<1x128xf32> to vector<16x128xf32>
    %8 = arith.addf %5, %7 : vector<16x128xf32>
    %cst_10 = arith.constant 0.00999999977 : f32
    %9 = vector.broadcast %cst_10 : f32 to vector<16x128xf32>
    %10 = arith.mulf %9, %8 : vector<16x128xf32>
    %11 = arith.maximumf %8, %10 : vector<16x128xf32>
    %12 = arith.truncf %11 : vector<16x128xf32> to vector<16x128xbf16>
    %c0_11 = arith.constant 0 : index
    %c0_12 = arith.constant 0 : index
    %13 = vector.load %arg11[%c0_11, %c0_12] : memref<16x128xf32, #tpu.memory_space<vmem>>, vector<16x128xf32>
    %c0_13 = arith.constant 0 : index
    %c0_14 = arith.constant 0 : index
    %14 = vector.load %arg7[%c0_13, %c0_14] : memref<128x128xbf16, #tpu.memory_space<vmem>>, vector<128x128xbf16>
    %cst_15 = arith.constant dense<0.000000e+00> : vector<16x128xf32>
    %15 = tpu.matmul %12, %14, %cst_15 {dimension_numbers = #tpu.dot_dimension_numbers<[1], [0], [0], [1], [0, 0, 1, 1], [], []>} : vector<16x128xbf16>, vector<128x128xbf16>, vector<16x128xf32> -> vector<16x128xf32>
    %16 = arith.addf %13, %15 : vector<16x128xf32>
    %c0_16 = arith.constant 0 : index
    %c0_17 = arith.constant 0 : index
    %17 = vector.load %arg11[%c0_16, %c0_17] : memref<16x128xf32, #tpu.memory_space<vmem>>, vector<16x128xf32>
    tpu.vector_store %arg11[%c0_16, %c0_17], %16 {strides = array<i32>} : memref<16x128xf32, #tpu.memory_space<vmem>>, vector<16x128xf32>,
    %c0_18 = arith.constant 0 : index
    %c0_19 = arith.constant 0 : index
    %18 = vector.load %arg4[%c0_18, %c0_19] : memref<128x128xbf16, #tpu.memory_space<vmem>>, vector<128x128xbf16>
    %cst_20 = arith.constant dense<0.000000e+00> : vector<16x128xf32>
    %19 = tpu.matmul %12, %18, %cst_20 {dimension_numbers = #tpu.dot_dimension_numbers<[1], [0], [0], [1], [0, 0, 1, 1], [], []>} : vector<16x128xbf16>, vector<128x128xbf16>, vector<16x128xf32> -> vector<16x128xf32>
    %c0_21 = arith.constant 0 : index
    %c0_22 = arith.constant 0 : index
    %20 = vector.load %arg5[%c0_21, %c0_22] : memref<1x128xf32, #tpu.memory_space<vmem>>, vector<1x128xf32>
    %21 = vector.broadcast %20 : vector<1x128xf32> to vector<16x128xf32>
    %22 = arith.addf %19, %21 : vector<16x128xf32>
    %cst_23 = arith.constant 0.00999999977 : f32
    %23 = vector.broadcast %cst_23 : f32 to vector<16x128xf32>
    %24 = arith.mulf %23, %22 : vector<16x128xf32>
    %25 = arith.maximumf %22, %24 : vector<16x128xf32>
    %26 = arith.truncf %25 : vector<16x128xf32> to vector<16x128xbf16>
    %c0_24 = arith.constant 0 : index
    %c0_25 = arith.constant 0 : index
    %27 = vector.load %arg11[%c0_24, %c0_25] : memref<16x128xf32, #tpu.memory_space<vmem>>, vector<16x128xf32>
    %c0_26 = arith.constant 0 : index
    %c0_27 = arith.constant 0 : index
    %28 = vector.load %arg8[%c0_26, %c0_27] : memref<128x128xbf16, #tpu.memory_space<vmem>>, vector<128x128xbf16>
    %cst_28 = arith.constant dense<0.000000e+00> : vector<16x128xf32>
    %29 = tpu.matmul %26, %28, %cst_28 {dimension_numbers = #tpu.dot_dimension_numbers<[1], [0], [0], [1], [0, 0, 1, 1], [], []>} : vector<16x128xbf16>, vector<128x128xbf16>, vector<16x128xf32> -> vector<16x128xf32>
    %30 = arith.addf %27, %29 : vector<16x128xf32>
    %c0_29 = arith.constant 0 : index
    %c0_30 = arith.constant 0 : index
    %31 = vector.load %arg11[%c0_29, %c0_30] : memref<16x128xf32, #tpu.memory_space<vmem>>, vector<16x128xf32>
    tpu.vector_store %arg11[%c0_29, %c0_30], %30 {strides = array<i32>} : memref<16x128xf32, #tpu.memory_space<vmem>>, vector<16x128xf32>,
    %c0_31 = arith.constant 0 : index
    %c0_32 = arith.constant 0 : index
    %32 = vector.load %arg11[%c0_31, %c0_32] : memref<16x128xf32, #tpu.memory_space<vmem>>, vector<16x128xf32>
    %c0_33 = arith.constant 0 : index
    %c0_34 = arith.constant 0 : index
    %33 = vector.load %arg9[%c0_33, %c0_34] : memref<1x128xf32, #tpu.memory_space<vmem>>, vector<1x128xf32>
    %34 = vector.broadcast %33 : vector<1x128xf32> to vector<16x128xf32>
    %35 = arith.addf %32, %34 : vector<16x128xf32>
    %c0_35 = arith.constant 0 : index
    %c0_36 = arith.constant 0 : index
    %36 = vector.load %arg10[%c0_35, %c0_36] : memref<16x128xf32, #tpu.memory_space<vmem>>, vector<16x128xf32>
    tpu.vector_store %arg10[%c0_35, %c0_36], %35 {strides = array<i32>} : memref<16x128xf32, #tpu.memory_space<vmem>>, vector<16x128xf32>,
    return
  }
  func.func @transform_0(%arg0: i32) -> (i32, i32) {
    %c0_i32 = arith.constant 0 : i32
    %c0_i32_0 = arith.constant 0 : i32
    return %arg0, %c0_i32 : i32, i32
  }
  func.func @transform_1(%arg0: i32) -> (i32, i32) {
    %c0_i32 = arith.constant 0 : i32
    %c0_i32_0 = arith.constant 0 : i32
    %c0_i32_1 = arith.constant 0 : i32
    return %c0_i32, %c0_i32_0 : i32, i32
  }
  func.func @transform_2(%arg0: i32) -> (i32, i32) {
    %c0_i32 = arith.constant 0 : i32
    %c0_i32_0 = arith.constant 0 : i32
    %c0_i32_1 = arith.constant 0 : i32
    return %c0_i32, %c0_i32_0 : i32, i32
  }
  func.func @transform_3(%arg0: i32) -> (i32, i32) {
    %c0_i32 = arith.constant 0 : i32
    %c0_i32_0 = arith.constant 0 : i32
    %c0_i32_1 = arith.constant 0 : i32
    return %c0_i32, %c0_i32_0 : i32, i32
  }
  func.func @transform_4(%arg0: i32) -> (i32, i32) {
    %c0_i32 = arith.constant 0 : i32
    %c0_i32_0 = arith.constant 0 : i32
    %c0_i32_1 = arith.constant 0 : i32
    return %c0_i32, %c0_i32_0 : i32, i32
  }
  func.func @transform_5(%arg0: i32) -> (i32, i32) {
    %c0_i32 = arith.constant 0 : i32
    %c0_i32_0 = arith.constant 0 : i32
    %c0_i32_1 = arith.constant 0 : i32
    return %c0_i32, %c0_i32_0 : i32, i32
  }
  func.func @transform_6(%arg0: i32) -> (i32, i32) {
    %c0_i32 = arith.constant 0 : i32
    %c0_i32_0 = arith.constant 0 : i32
    %c0_i32_1 = arith.constant 0 : i32
    return %c0_i32, %c0_i32_0 : i32, i32
  }
  func.func @transform_7(%arg0: i32) -> (i32, i32) {
    %c0_i32 = arith.constant 0 : i32
    %c0_i32_0 = arith.constant 0 : i32
    %c0_i32_1 = arith.constant 0 : i32
    return %c0_i32, %c0_i32_0 : i32, i32
  }
  func.func @transform_8(%arg0: i32) -> (i32, i32) {
    %c0_i32 = arith.constant 0 : i32
    %c0_i32_0 = arith.constant 0 : i32
    %c0_i32_1 = arith.constant 0 : i32
    return %c0_i32, %c0_i32_0 : i32, i32
  }
  func.func @transform_9(%arg0: i32) -> (i32, i32) {
    %c0_i32 = arith.constant 0 : i32
    %c0_i32_0 = arith.constant 0 : i32
    return %arg0, %c0_i32 : i32, i32
  }
}

</mosaic_0001>

<bundles_post_ra>
// kernel: tpu_custom_call.1
= control target key start
LH: loop header
LB: loop body
LE: loop exit
PB: predicated region body
PF: predicated region fallthrough
CT: control target
= control target key end

     0   :  { %14 = vsyncpa [#allocation4], 0  ;;  %s945_s0 = inlined_call_operand.hbm [shape: bf16[16,32], index: 0, kind: input, shape index: {}]   ;;  %s946_s1 = inlined_call_operand.hbm [shape: bf16[32,128], index: 1, kind: input, shape index: {}]   ;;  %s947_s2 = inlined_call_operand.vmem [shape: f32[1,128], index: 2, kind: input, shape index: {}]   ;;  %s948_s3 = inlined_call_operand.hbm [shape: bf16[128,128], index: 3, kind: input, shape index: {}]   ;;  %s949_s4 = inlined_call_operand.vmem [shape: f32[1,128], index: 4, kind: input, shape index: {}]   ;;  %s950_s5 = inlined_call_operand.hbm [shape: bf16[32,128], index: 5, kind: input, shape index: {}]   ;;  %s951_s6 = inlined_call_operand.hbm [shape: bf16[128,128], index: 6, kind: input, shape index: {}]   ;;  %s952_s7 = inlined_call_operand.hbm [shape: bf16[128,128], index: 7, kind: input, shape index: {}]   ;;  %s953_s8 = inlined_call_operand.vmem [shape: f32[1,128], index: 8, kind: input, shape index: {}]   ;;  %s954_s9 = inlined_call_operand.hbm [shape: f32[16,128], index: 9, kind: output, shape index: {}]  }
   0x1   :  { %15 = vsyncpa [#allocation7], 0 }
   0x2   :  { %16 = vsyncpa [#allocation10], 0 }
   0x3   :  { %17 = vsyncpa [#allocation13], 0 }
   0x4   :  { %18 = vsyncpa [#allocation5], 0  ;;  %s36_s11 = sshll.u32 %s946_s1, 4  ;;  %s836_s12 = smov [#allocation6]   ;;  %s37_s11 = int_to_ptr.hbm [resolvable:$true] %s36_s11 }
   0x5   :  { %s38_s13 = sshll.u32 %s836_s12, 4  ;;  %s66_s16 = sshll.u32 %s950_s5, 4  ;;  %s39_s13 = int_to_ptr.vmem [resolvable:$true] %s38_s13  ;;  %s67_s16 = int_to_ptr.hbm [resolvable:$true] %s66_s16 }
   0x6   :  { %s837_s17 = smov 64   ;;  %s838_s18 = smov 4  }
   0x7   :  { %44 = dma.hbm_to_vmem [thread:$0]  %s37_s11, 256, %s39_s13, [#allocation7], %s837_s17, %s837_s17, %s838_s18  }
   0x8   :  { %s839_s19 = smov [#allocation9]   ;;  %s23_s1 = sshll.u32 %s945_s0, 4  ;;  %s24_s1 = int_to_ptr.hbm [resolvable:$true] %s23_s1 }
   0x9   :  { %s68_s20 = sshll.u32 %s839_s19, 4  ;;  %s51_s24 = sshll.u32 %s948_s3, 4  ;;  %s69_s20 = int_to_ptr.vmem [resolvable:$true] %s68_s20  ;;  %s52_s24 = int_to_ptr.hbm [resolvable:$true] %s51_s24 }
   0xa   :  { %74 = dma.hbm_to_vmem [thread:$0]  %s67_s16, 256, %s69_s20, [#allocation10], %s837_s17, %s837_s17, %s838_s18  }
   0xb   :  { %s840_s25 = smov [#allocation3]   ;;  %s841_s27 = smov [#allocation8]  }
   0xc   :  { %s25_s26 = sshll.u32 %s840_s25, 4  ;;  %s53_s0 = sshll.u32 %s841_s27, 4  ;;  %s26_s26 = int_to_ptr.vmem [resolvable:$true] %s25_s26  ;;  %s54_s0 = int_to_ptr.vmem [resolvable:$true] %s53_s0 }
   0xd   :  { %31 = dma.hbm_to_vmem [thread:$0]  %s24_s1, 128, %s26_s26, [#allocation4], %s837_s17, %s837_s17, %s838_s18  }
   0xe   :  { %s79_s30 = sshll.u32 %s951_s6, 4  ;;  %s92_s11 = sshll.u32 %s952_s7, 4  ;;  %s80_s30 = int_to_ptr.hbm [resolvable:$true] %s79_s30  ;;  %s93_s11 = int_to_ptr.hbm [resolvable:$true] %s92_s11 }
   0xf   :  { %59 = dma.hbm_to_vmem [thread:$0]  %s52_s24, 1024, %s54_s0, [#allocation7], %s837_s17, %s837_s17, %s838_s18  }
  0x10   :  { %s842_s12 = smov [#allocation11]   ;;  %s843_s14 = smov [#allocation12]  }
  0x11   :  { %s81_s13 = sshll.u32 %s842_s12, 4  ;;  %s94_s6 = sshll.u32 %s843_s14, 4  ;;  %s82_s13 = int_to_ptr.vmem [resolvable:$true] %s81_s13  ;;  %s95_s6 = int_to_ptr.vmem [resolvable:$true] %s94_s6 }
  0x12   :  { %87 = dma.hbm_to_vmem [thread:$0]  %s80_s30, 1024, %s82_s13, [#allocation10], %s837_s17, %s837_s17, %s838_s18  }
  0x13   :  { %100 = dma.hbm_to_vmem [thread:$0]  %s93_s11, 1024, %s95_s6, [#allocation13], %s837_s17, %s837_s17, %s838_s18  }
  0x14   :  { %826 = dma.done.wait [#allocation4], 128  }
  0x15   :  { %827 = vsyncadd [#allocation4], 4294967168 }
  0x16   :  { %828 = dma.done.wait [#allocation7], 1280  }
  0x17   :  { %829 = vsyncadd [#allocation7], 4294966016 }
  0x18   :  { %830 = dma.done.wait [#allocation10], 1280  }
  0x19   :  { %831 = vsyncadd [#allocation10], 4294966016 }
  0x1a   :  { %832 = dma.done.wait [#allocation13], 1024  }
  0x1b   :  { %833 = vsyncadd [#allocation13], 4294966272  ;;  %v617_v0 = vld [vmem:[#allocation9 + $0x8] sm:$0xff]  ;;  %v616_v1 = vld [vmem:[#allocation9] sm:$0xff]  ;;  %vm151_vm0 = vcmask 261120   ;;  %s481_s22 = sshll.u32 %s954_s9, 4  ;;  %s482_s22 = int_to_ptr.hbm [resolvable:$true] %s481_s22 }
  0x1c   :  { %161 = vmatpush.bf16.msra.mxu1 %v617_v0  ;;  %v619_v2 = vld [vmem:[#allocation6 + $0x8] sm:$0xff]  ;;  %v615_v3 = vld [vmem:[#allocation3] sm:$0xff]  ;;  %v618_v4 = vld [vmem:[#allocation6] sm:$0xff]  ;;  %s845_s1 = smov 128  }
  0x1d   :  { %v627_v5 = vld [vmem:[#allocation11 + $0x38] sm:$0xff]  ;;  %v635_v6 = vld [vmem:[#allocation8 + $0x38] sm:$0xff]  ;;  %v626_v7 = vld [vmem:[#allocation11 + $0x30] sm:$0xff] }
  0x1e   :  { %276 = vmatpush.bf16.msra.mxu2 %v627_v5  ;;  %362 = vmatpush.bf16.msra.mxu3 %v635_v6  ;;  %v634_v8 = vld [vmem:[#allocation8 + $0x30] sm:$0xff]  ;;  %v625_v9 = vld [vmem:[#allocation11 + $0x28] sm:$0xff]  ;;  %v633_v10 = vld [vmem:[#allocation8 + $0x28] sm:$0xff] }
  0x1f   :  { %v624_v11 = vld [vmem:[#allocation11 + $0x20] sm:$0xff]  ;;  %v632_v12 = vld [vmem:[#allocation8 + $0x20] sm:$0xff]  ;;  %v623_v13 = vld [vmem:[#allocation11 + $0x18] sm:$0xff] }
  0x20   :  { %162 = vmatpush.bf16.msra.mxu1 %v616_v1  ;;  %v631_v14 = vld [vmem:[#allocation8 + $0x18] sm:$0xff]  ;;  %v622_v15 = vld [vmem:[#allocation11 + $0x10] sm:$0xff]  ;;  %v630_v16 = vld [vmem:[#allocation8 + $0x10] sm:$0xff] }
  0x21   :  { %v621_v17 = vld [vmem:[#allocation11 + $0x8] sm:$0xff]  ;;  %v629_v18 = vld [vmem:[#allocation8 + $0x8] sm:$0xff]  ;;  %v620_v19 = vld [vmem:[#allocation11] sm:$0xff] }
  0x22   :  { %277 = vmatpush.bf16.msra.mxu2 %v626_v7  ;;  %363 = vmatpush.bf16.msra.mxu3 %v634_v8  ;;  %v628_v20 = vld [vmem:[#allocation8] sm:$0xff]  ;;  %v643_v22 = vld [vmem:[#allocation12 + $0x38] sm:$0xff]  ;;  %v641_v24 = vld [vmem:[#allocation12 + $0x28] sm:$0xff] }
  0x23   :  { %509 = vmatmul.msk.bf16.vlgmr.msra.gmra.mxu1 %vm151_vm0, %v615_v3  ;;  %447 = vmatpush.bf16.msra.mxu0 %v643_v22  ;;  %v642_v23 = vld [vmem:[#allocation12 + $0x30] sm:$0xff]  ;;  %v640_v26 = vld [vmem:[#allocation12 + $0x20] sm:$0xff]  ;;  %v655_v28 = vld [vmem:[%s947_s2] ss:$0 sm:$0xff] }
  0x24   :  { %197 = vmatpush.bf16.msrb.mxu1 %v619_v2  ;;  %v639_v37 = vld [vmem:[#allocation12 + $0x18] sm:$0xff]  ;;  %v638_v38 = vld [vmem:[#allocation12 + $0x10] sm:$0xff]  ;;  %v637_v39 = vld [vmem:[#allocation12 + $0x8] sm:$0xff] }
  0x25   :  { %v636_v40 = vld [vmem:[#allocation12] sm:$0xff]  ;;  %v656_v42 = vld [vmem:[%s949_s4] ss:$0 sm:$0xff]  ;;  %s844_s4 = smov [#allocation14]  }
  0x26   :  { %278 = vmatpush.bf16.msra.mxu2 %v625_v9  ;;  %364 = vmatpush.bf16.msra.mxu3 %v633_v10  ;;  %v657_v53 = vld [vmem:[%s953_s8] ss:$0 sm:$0xff]  ;;  %s479_s19 = sshll.u32 %s844_s4, 4  ;;  %s846_s8 = smov 8   ;;  %s480_s19 = int_to_ptr.vmem [resolvable:$true] %s479_s19 }
  0x27   :  { %448 = vmatpush.bf16.msra.mxu0 %v642_v23 }
  0x28   :  { %198 = vmatpush.bf16.msrb.mxu1 %v618_v4 }
  0x2a   :  { %279 = vmatpush.bf16.msra.mxu2 %v624_v11  ;;  %365 = vmatpush.bf16.msra.mxu3 %v632_v12 }
  0x2b   :  { %449 = vmatpush.bf16.msra.mxu0 %v641_v24 }
  0x2e   :  { %280 = vmatpush.bf16.msra.mxu2 %v623_v13  ;;  %366 = vmatpush.bf16.msra.mxu3 %v631_v14 }
  0x2f   :  { %450 = vmatpush.bf16.msra.mxu0 %v640_v26 }
  0x32   :  { %281 = vmatpush.bf16.msra.mxu2 %v622_v15  ;;  %367 = vmatpush.bf16.msra.mxu3 %v630_v16 }
  0x33   :  { %518 = vmatmul.msk.bf16.vlgmr.msrb.gmra.mxu1 %vm151_vm0, %v615_v3  ;;  %451 = vmatpush.bf16.msra.mxu0 %v639_v37 }
  0x36   :  { %282 = vmatpush.bf16.msra.mxu2 %v621_v17  ;;  %368 = vmatpush.bf16.msra.mxu3 %v629_v18 }
  0x37   :  { %452 = vmatpush.bf16.msra.mxu0 %v638_v38 }
  0x3a   :  { %283 = vmatpush.bf16.msra.mxu2 %v620_v19  ;;  %369 = vmatpush.bf16.msra.mxu3 %v628_v20 }
  0x3b   :  { %453 = vmatpush.bf16.msra.mxu0 %v637_v39 }
  0x3f   :  { %454 = vmatpush.bf16.msra.mxu0 %v636_v40 }
  0xa0   :  { %v164_v21 = vpop.f32.mrf.mxu1 }
  0xa8   :  { %v166_v25 = vpop.f32.mrf.mxu1 }
  0xb0   :  { %v200_v27 = vpop.f32.mrf.mxu1 }
  0xb1   :  { %v201_v29 = vadd.f32 %v655_v28, %v200_v27 }
  0xb3   :  { %v205_v31 = vmul.f32 0.01, %v201_v29 }
  0xb5   :  { %v207_v34 = vmax.f32 %v201_v29, %v205_v31 }
  0xb8   :  { %v202_v30 = vpop.f32.mrf.mxu1 }
  0xb9   :  { %v203_v32 = vadd.f32 %v655_v28, %v202_v30 }
  0xbb   :  { %v206_v33 = vmul.f32 0.01, %v203_v32 }
  0xbd   :  { %v208_v35 = vmax.f32 %v203_v32, %v206_v33 }
  0xbf   :  { %v209_v36 = vpack.c.bf16 %v208_v35, %v207_v34 }
  0xc1   :  { %284 = vmatmul.bf16.vlgmr.msra.gmra.mxu2 %v209_v36  ;;  %370 = vmatmul.bf16.vlgmr.msra.gmra.mxu3 %v209_v36 }
 0x144   :  { %v371_v41 = vpop.f32.mrf.mxu3  ;;  %v285_v51 = vpop.f32.mrf.mxu2 }
 0x145   :  { %v372_v43 = vadd.f32 %v656_v42, %v371_v41  ;;  %v290_v52 = vadd.f32 %v285_v51, %v164_v21 }
 0x147   :  { %v376_v45 = vmul.f32 0.01, %v372_v43 }
 0x149   :  { %v378_v48 = vmax.f32 %v372_v43, %v376_v45 }
 0x14c   :  { %v373_v44 = vpop.f32.mrf.mxu3  ;;  %v287_v57 = vpop.f32.mrf.mxu2 }
 0x14d   :  { %v374_v46 = vadd.f32 %v656_v42, %v373_v44  ;;  %v291_v58 = vadd.f32 %v287_v57, %v166_v25 }
 0x14f   :  { %v377_v47 = vmul.f32 0.01, %v374_v46 }
 0x151   :  { %v379_v49 = vmax.f32 %v374_v46, %v377_v47 }
 0x153   :  { %v380_v50 = vpack.c.bf16 %v379_v49, %v378_v48 }
 0x155   :  { %455 = vmatmul.bf16.vlgmr.msra.gmra.mxu0 %v380_v50 }
 0x1d2   :  { %v456_v54 = vpop.f32.mrf.mxu0 }
 0x1d3   :  { %v461_v55 = vadd.f32 %v456_v54, %v290_v52 }
 0x1d5   :  { %v471_v56 = vadd.f32 %v657_v53, %v461_v55 }
 0x1d7   :  { %473 = vst [vmem:[#allocation14] sm:$0xff] %v471_v56 }
 0x1da   :  { %v458_v59 = vpop.f32.mrf.mxu0 }
 0x1db   :  { %v462_v60 = vadd.f32 %v458_v59, %v291_v58 }
 0x1dd   :  { %v472_v61 = vadd.f32 %v657_v53, %v462_v60 }
 0x1df   :  { %474 = vst [vmem:[#allocation14 + $0x8] sm:$0xff] %v472_v61 }
 0x1e0   :  { %487 = dma.vmem_to_hbm [thread:$0]  %s480_s19, 256, %s482_s22, [#allocation5], %s845_s1, %s845_s1, %s846_s8  }
 0x1e1   :  { %834 = dma.done.wait [#allocation5], 256  }
 0x1e2   :  { %835 = vsyncadd [#allocation5], 4294967040 }
 0x1e3   :  { %492 = vsyncpa [#allocation4], 1 }
 0x1e4   :  { %493 = vsyncpa [#allocation7], 1 }
 0x1e5   :  { %494 = vsyncpa [#allocation10], 1 }
 0x1e6   :  { %495 = vsyncpa [#allocation13], 1 }
 0x1e7   :  { %496 = vsyncpa [#allocation5], 1 }

// kernel: tpu_custom_call.1
= control target key start
LH: loop header
LB: loop body
LE: loop exit
PB: predicated region body
PF: predicated region fallthrough
CT: control target
= control target key end

     0   :  { %14 = vsyncpa [#allocation4], 0  ;;  %s945_s0 = inlined_call_operand.hbm [shape: bf16[16,32], index: 0, kind: input, shape index: {}]   ;;  %s946_s1 = inlined_call_operand.hbm [shape: bf16[32,128], index: 1, kind: input, shape index: {}]   ;;  %s947_s2 = inlined_call_operand.vmem [shape: f32[1,128], index: 2, kind: input, shape index: {}]   ;;  %s948_s3 = inlined_call_operand.hbm [shape: bf16[128,128], index: 3, kind: input, shape index: {}]   ;;  %s949_s4 = inlined_call_operand.vmem [shape: f32[1,128], index: 4, kind: input, shape index: {}]   ;;  %s950_s5 = inlined_call_operand.hbm [shape: bf16[32,128], index: 5, kind: input, shape index: {}]   ;;  %s951_s6 = inlined_call_operand.hbm [shape: bf16[128,128], index: 6, kind: input, shape index: {}]   ;;  %s952_s7 = inlined_call_operand.hbm [shape: bf16[128,128], index: 7, kind: input, shape index: {}]   ;;  %s953_s8 = inlined_call_operand.vmem [shape: f32[1,128], index: 8, kind: input, shape index: {}]   ;;  %s954_s9 = inlined_call_operand.hbm [shape: f32[16,128], index: 9, kind: output, shape index: {}]  }
   0x1   :  { %15 = vsyncpa [#allocation7], 0 }
   0x2   :  { %16 = vsyncpa [#allocation10], 0 }
   0x3   :  { %17 = vsyncpa [#allocation13], 0 }
   0x4   :  { %18 = vsyncpa [#allocation5], 0  ;;  %s36_s11 = sshll.u32 %s946_s1, 4  ;;  %s836_s12 = smov [#allocation6]   ;;  %s37_s11 = int_to_ptr.hbm [resolvable:$true] %s36_s11 }
   0x5   :  { %s38_s13 = sshll.u32 %s836_s12, 4  ;;  %s66_s16 = sshll.u32 %s950_s5, 4  ;;  %s39_s13 = int_to_ptr.vmem [resolvable:$true] %s38_s13  ;;  %s67_s16 = int_to_ptr.hbm [resolvable:$true] %s66_s16 }
   0x6   :  { %s837_s17 = smov 64   ;;  %s838_s18 = smov 4  }
   0x7   :  { %44 = dma.hbm_to_vmem [thread:$0]  %s37_s11, 256, %s39_s13, [#allocation7], %s837_s17, %s837_s17, %s838_s18  }
   0x8   :  { %s839_s19 = smov [#allocation9]   ;;  %s23_s1 = sshll.u32 %s945_s0, 4  ;;  %s24_s1 = int_to_ptr.hbm [resolvable:$true] %s23_s1 }
   0x9   :  { %s68_s20 = sshll.u32 %s839_s19, 4  ;;  %s51_s24 = sshll.u32 %s948_s3, 4  ;;  %s69_s20 = int_to_ptr.vmem [resolvable:$true] %s68_s20  ;;  %s52_s24 = int_to_ptr.hbm [resolvable:$true] %s51_s24 }
   0xa   :  { %74 = dma.hbm_to_vmem [thread:$0]  %s67_s16, 256, %s69_s20, [#allocation10], %s837_s17, %s837_s17, %s838_s18  }
   0xb   :  { %s840_s25 = smov [#allocation3]   ;;  %s841_s27 = smov [#allocation8]  }
   0xc   :  { %s25_s26 = sshll.u32 %s840_s25, 4  ;;  %s53_s0 = sshll.u32 %s841_s27, 4  ;;  %s26_s26 = int_to_ptr.vmem [resolvable:$true] %s25_s26  ;;  %s54_s0 = int_to_ptr.vmem [resolvable:$true] %s53_s0 }
   0xd   :  { %31 = dma.hbm_to_vmem [thread:$0]  %s24_s1, 128, %s26_s26, [#allocation4], %s837_s17, %s837_s17, %s838_s18  }
   0xe   :  { %s79_s30 = sshll.u32 %s951_s6, 4  ;;  %s92_s11 = sshll.u32 %s952_s7, 4  ;;  %s80_s30 = int_to_ptr.hbm [resolvable:$true] %s79_s30  ;;  %s93_s11 = int_to_ptr.hbm [resolvable:$true] %s92_s11 }
   0xf   :  { %59 = dma.hbm_to_vmem [thread:$0]  %s52_s24, 1024, %s54_s0, [#allocation7], %s837_s17, %s837_s17, %s838_s18  }
  0x10   :  { %s842_s12 = smov [#allocation11]   ;;  %s843_s14 = smov [#allocation12]  }
  0x11   :  { %s81_s13 = sshll.u32 %s842_s12, 4  ;;  %s94_s6 = sshll.u32 %s843_s14, 4  ;;  %s82_s13 = int_to_ptr.vmem [resolvable:$true] %s81_s13  ;;  %s95_s6 = int_to_ptr.vmem [resolvable:$true] %s94_s6 }
  0x12   :  { %87 = dma.hbm_to_vmem [thread:$0]  %s80_s30, 1024, %s82_s13, [#allocation10], %s837_s17, %s837_s17, %s838_s18  }
  0x13   :  { %100 = dma.hbm_to_vmem [thread:$0]  %s93_s11, 1024, %s95_s6, [#allocation13], %s837_s17, %s837_s17, %s838_s18  }
  0x14   :  { %826 = dma.done.wait [#allocation4], 128  }
  0x15   :  { %827 = vsyncadd [#allocation4], 4294967168 }
  0x16   :  { %828 = dma.done.wait [#allocation7], 1280  }
  0x17   :  { %829 = vsyncadd [#allocation7], 4294966016 }
  0x18   :  { %830 = dma.done.wait [#allocation10], 1280  }
  0x19   :  { %831 = vsyncadd [#allocation10], 4294966016 }
  0x1a   :  { %832 = dma.done.wait [#allocation13], 1024  }
  0x1b   :  { %833 = vsyncadd [#allocation13], 4294966272  ;;  %v617_v0 = vld [vmem:[#allocation9 + $0x8] sm:$0xff]  ;;  %v616_v1 = vld [vmem:[#allocation9] sm:$0xff]  ;;  %vm151_vm0 = vcmask 261120   ;;  %s481_s22 = sshll.u32 %s954_s9, 4  ;;  %s482_s22 = int_to_ptr.hbm [resolvable:$true] %s481_s22 }
  0x1c   :  { %161 = vmatpush.bf16.msra.mxu1 %v617_v0  ;;  %v619_v2 = vld [vmem:[#allocation6 + $0x8] sm:$0xff]  ;;  %v615_v3 = vld [vmem:[#allocation3] sm:$0xff]  ;;  %v618_v4 = vld [vmem:[#allocation6] sm:$0xff]  ;;  %s845_s1 = smov 128  }
  0x1d   :  { %v627_v5 = vld [vmem:[#allocation11 + $0x38] sm:$0xff]  ;;  %v635_v6 = vld [vmem:[#allocation8 + $0x38] sm:$0xff]  ;;  %v626_v7 = vld [vmem:[#allocation11 + $0x30] sm:$0xff] }
  0x1e   :  { %276 = vmatpush.bf16.msra.mxu2 %v627_v5  ;;  %362 = vmatpush.bf16.msra.mxu3 %v635_v6  ;;  %v634_v8 = vld [vmem:[#allocation8 + $0x30] sm:$0xff]  ;;  %v625_v9 = vld [vmem:[#allocation11 + $0x28] sm:$0xff]  ;;  %v633_v10 = vld [vmem:[#allocation8 + $0x28] sm:$0xff] }
  0x1f   :  { %v624_v11 = vld [vmem:[#allocation11 + $0x20] sm:$0xff]  ;;  %v632_v12 = vld [vmem:[#allocation8 + $0x20] sm:$0xff]  ;;  %v623_v13 = vld [vmem:[#allocation11 + $0x18] sm:$0xff] }
  0x20   :  { %162 = vmatpush.bf16.msra.mxu1 %v616_v1  ;;  %v631_v14 = vld [vmem:[#allocation8 + $0x18] sm:$0xff]  ;;  %v622_v15 = vld [vmem:[#allocation11 + $0x10] sm:$0xff]  ;;  %v630_v16 = vld [vmem:[#allocation8 + $0x10] sm:$0xff] }
  0x21   :  { %v621_v17 = vld [vmem:[#allocation11 + $0x8] sm:$0xff]  ;;  %v629_v18 = vld [vmem:[#allocation8 + $0x8] sm:$0xff]  ;;  %v620_v19 = vld [vmem:[#allocation11] sm:$0xff] }
  0x22   :  { %277 = vmatpush.bf16.msra.mxu2 %v626_v7  ;;  %363 = vmatpush.bf16.msra.mxu3 %v634_v8  ;;  %v628_v20 = vld [vmem:[#allocation8] sm:$0xff]  ;;  %v643_v22 = vld [vmem:[#allocation12 + $0x38] sm:$0xff]  ;;  %v641_v24 = vld [vmem:[#allocation12 + $0x28] sm:$0xff] }
  0x23   :  { %509 = vmatmul.msk.bf16.vlgmr.msra.gmra.mxu1 %vm151_vm0, %v615_v3  ;;  %447 = vmatpush.bf16.msra.mxu0 %v643_v22  ;;  %v642_v23 = vld [vmem:[#allocation12 + $0x30] sm:$0xff]  ;;  %v640_v26 = vld [vmem:[#allocation12 + $0x20] sm:$0xff]  ;;  %v655_v28 = vld [vmem:[%s947_s2] ss:$0 sm:$0xff] }
  0x24   :  { %197 = vmatpush.bf16.msrb.mxu1 %v619_v2  ;;  %v639_v37 = vld [vmem:[#allocation12 + $0x18] sm:$0xff]  ;;  %v638_v38 = vld [vmem:[#allocation12 + $0x10] sm:$0xff]  ;;  %v637_v39 = vld [vmem:[#allocation12 + $0x8] sm:$0xff] }
  0x25   :  { %v636_v40 = vld [vmem:[#allocation12] sm:$0xff]  ;;  %v656_v42 = vld [vmem:[%s949_s4] ss:$0 sm:$0xff]  ;;  %s844_s4 = smov [#allocation14]  }
  0x26   :  { %278 = vmatpush.bf16.msra.mxu2 %v625_v9  ;;  %364 = vmatpush.bf16.msra.mxu3 %v633_v10  ;;  %v657_v53 = vld [vmem:[%s953_s8] ss:$0 sm:$0xff]  ;;  %s479_s19 = sshll.u32 %s844_s4, 4  ;;  %s846_s8 = smov 8   ;;  %s480_s19 = int_to_ptr.vmem [resolvable:$true] %s479_s19 }
  0x27   :  { %448 = vmatpush.bf16.msra.mxu0 %v642_v23 }
  0x28   :  { %198 = vmatpush.bf16.msrb.mxu1 %v618_v4 }
  0x2a   :  { %279 = vmatpush.bf16.msra.mxu2 %v624_v11  ;;  %365 = vmatpush.bf16.msra.mxu3 %v632_v12 }
  0x2b   :  { %449 = vmatpush.bf16.msra.mxu0 %v641_v24 }
  0x2e   :  { %280 = vmatpush.bf16.msra.mxu2 %v623_v13  ;;  %366 = vmatpush.bf16.msra.mxu3 %v631_v14 }
  0x2f   :  { %450 = vmatpush.bf16.msra.mxu0 %v640_v26 }
  0x32   :  { %281 = vmatpush.bf16.msra.mxu2 %v622_v15  ;;  %367 = vmatpush.bf16.msra.mxu3 %v630_v16 }
  0x33   :  { %518 = vmatmul.msk.bf16.vlgmr.msrb.gmra.mxu1 %vm151_vm0, %v615_v3  ;;  %451 = vmatpush.bf16.msra.mxu0 %v639_v37 }
  0x36   :  { %282 = vmatpush.bf16.msra.mxu2 %v621_v17  ;;  %368 = vmatpush.bf16.msra.mxu3 %v629_v18 }
  0x37   :  { %452 = vmatpush.bf16.msra.mxu0 %v638_v38 }
  0x3a   :  { %283 = vmatpush.bf16.msra.mxu2 %v620_v19  ;;  %369 = vmatpush.bf16.msra.mxu3 %v628_v20 }
  0x3b   :  { %453 = vmatpush.bf16.msra.mxu0 %v637_v39 }
  0x3f   :  { %454 = vmatpush.bf16.msra.mxu0 %v636_v40 }
  0xa0   :  { %v164_v21 = vpop.f32.mrf.mxu1 }
  0xa8   :  { %v166_v25 = vpop.f32.mrf.mxu1 }
  0xb0   :  { %v200_v27 = vpop.f32.mrf.mxu1 }
  0xb1   :  { %v201_v29 = vadd.f32 %v655_v28, %v200_v27 }
  0xb3   :  { %v205_v31 = vmul.f32 0.01, %v201_v29 }
  0xb5   :  { %v207_v34 = vmax.f32 %v201_v29, %v205_v31 }
  0xb8   :  { %v202_v30 = vpop.f32.mrf.mxu1 }
  0xb9   :  { %v203_v32 = vadd.f32 %v655_v28, %v202_v30 }
  0xbb   :  { %v206_v33 = vmul.f32 0.01, %v203_v32 }
  0xbd   :  { %v208_v35 = vmax.f32 %v203_v32, %v206_v33 }
  0xbf   :  { %v209_v36 = vpack.c.bf16 %v208_v35, %v207_v34 }
  0xc1   :  { %284 = vmatmul.bf16.vlgmr.msra.gmra.mxu2 %v209_v36  ;;  %370 = vmatmul.bf16.vlgmr.msra.gmra.mxu3 %v209_v36 }
 0x144   :  { %v371_v41 = vpop.f32.mrf.mxu3  ;;  %v285_v51 = vpop.f32.mrf.mxu2 }
 0x145   :  { %v372_v43 = vadd.f32 %v656_v42, %v371_v41  ;;  %v290_v52 = vadd.f32 %v285_v51, %v164_v21 }
 0x147   :  { %v376_v45 = vmul.f32 0.01, %v372_v43 }
 0x149   :  { %v378_v48 = vmax.f32 %v372_v43, %v376_v45 }
 0x14c   :  { %v373_v44 = vpop.f32.mrf.mxu3  ;;  %v287_v57 = vpop.f32.mrf.mxu2 }
 0x14d   :  { %v374_v46 = vadd.f32 %v656_v42, %v373_v44  ;;  %v291_v58 = vadd.f32 %v287_v57, %v166_v25 }
 0x14f   :  { %v377_v47 = vmul.f32 0.01, %v374_v46 }
 0x151   :  { %v379_v49 = vmax.f32 %v374_v46, %v377_v47 }
 0x153   :  { %v380_v50 = vpack.c.bf16 %v379_v49, %v378_v48 }
 0x155   :  { %455 = vmatmul.bf16.vlgmr.msra.gmra.mxu0 %v380_v50 }
 0x1d2   :  { %v456_v54 = vpop.f32.mrf.mxu0 }
 0x1d3   :  { %v461_v55 = vadd.f32 %v456_v54, %v290_v52 }
 0x1d5   :  { %v471_v56 = vadd.f32 %v657_v53, %v461_v55 }
 0x1d7   :  { %473 = vst [vmem:[#allocation14] sm:$0xff] %v471_v56 }
 0x1da   :  { %v458_v59 = vpop.f32.mrf.mxu0 }
 0x1db   :  { %v462_v60 = vadd.f32 %v458_v59, %v291_v58 }
 0x1dd   :  { %v472_v61 = vadd.f32 %v657_v53, %v462_v60 }
 0x1df   :  { %474 = vst [vmem:[#allocation14 + $0x8] sm:$0xff] %v472_v61 }
 0x1e0   :  { %487 = dma.vmem_to_hbm [thread:$0]  %s480_s19, 256, %s482_s22, [#allocation5], %s845_s1, %s845_s1, %s846_s8  }
 0x1e1   :  { %834 = dma.done.wait [#allocation5], 256  }
 0x1e2   :  { %835 = vsyncadd [#allocation5], 4294967040 }
 0x1e3   :  { %492 = vsyncpa [#allocation4], 1 }
 0x1e4   :  { %493 = vsyncpa [#allocation7], 1 }
 0x1e5   :  { %494 = vsyncpa [#allocation10], 1 }
 0x1e6   :  { %495 = vsyncpa [#allocation13], 1 }
 0x1e7   :  { %496 = vsyncpa [#allocation5], 1 }

</bundles_post_ra>
